<compile_context>
chip_gen: v7x
topology: tpu7x:2x2x1
jax: 0.10.0
libtpu: 0.0.40
codegen_flags: <defaults>
</compile_context>

<pallas_src>
from collections import abc

import jax
import jax.numpy as jnp
from jax.experimental import pallas as pl
from jax.experimental.pallas import tpu as pltpu


def _make_dispatch_kernel(num_streams: int):
    """Kernel body: num_streams HBM in-refs, num_streams HBM out-refs, DMA sems."""

    def kernel(*refs):
        in_refs = refs[:num_streams]
        out_refs = refs[num_streams:2 * num_streams]
        sem = refs[2 * num_streams]

        # Issue all copies back-to-back so they run concurrently on the DMA
        # engines (no VMEM staging, no vld/vst, no per-grid-step overhead).
        copies = []
        for u in range(num_streams):
            cp = pltpu.make_async_copy(in_refs[u], out_refs[u], sem.at[u])
            cp.start()
            copies.append(cp)
        for cp in copies:
            cp.wait()

    return kernel


def dispatch_copy(streams):
    """Copy each stream with one direct HBM->HBM DMA (all concurrent)."""
    num = len(streams)
    assert num > 0
    return pl.pallas_call(
        _make_dispatch_kernel(num),
        out_shape=tuple(jax.ShapeDtypeStruct(x.shape, x.dtype) for x in streams),
        in_specs=[pl.BlockSpec(memory_space=pl.ANY) for _ in range(num)],
        out_specs=tuple(pl.BlockSpec(memory_space=pl.ANY) for _ in range(num)),
        scratch_shapes=[pltpu.SemaphoreType.DMA((num,))],
    )(*streams)


class ParallelDispatchPallas:
    """JAX/Pallas equivalent of continual.ParallelDispatch."""

    def __init__(self, dispatch_mapping):
        def is_int_or_valid_list(x):
            if isinstance(x, int):
                return True
            if isinstance(x, abc.Sequence):
                return all(is_int_or_valid_list(z) for z in x)
            return False

        assert isinstance(dispatch_mapping, abc.Sequence) and is_int_or_valid_list(
            dispatch_mapping
        ), "The dispatch_mapping should be Sequence[Union[int, Sequence[int]]]"
        self.dispatch_mapping = dispatch_mapping

        # Normalise the nested mapping (static Python) and collect the stream
        # ids.  Only the unique ids drive tensor data movement; duplicates
        # re-use the same copied array in the rebuilt output structure.
        flat_ids = []

        def normalize(m):
            if isinstance(m, abc.Sequence):
                return [normalize(z) for z in m]
            sid = int(m)
            flat_ids.append(sid)
            return sid

        self._structure = [normalize(m) for m in dispatch_mapping]
        self._unique_ids = list(dict.fromkeys(flat_ids))  # order of first use

    def __call__(self, inputs):
        """inputs: list of arrays (streams need not share a shape)."""
        assert len(inputs) > 0

        if self._unique_ids:
            streams = [inputs[i] for i in self._unique_ids]
            copies = dispatch_copy(streams)
            by_stream = dict(zip(self._unique_ids, copies))
        else:
            by_stream = {}

        def rebuild(s):
            if isinstance(s, list):
                return [rebuild(z) for z in s]
            return by_stream[s]

        # Nested list re-assembly is Python structure, not tensor compute.
        return [rebuild(s) for s in self._structure]


def _reference(inputs, dispatch_mapping):
    """Pure-JAX/Python reference matching the PyTorch forward exactly."""

    def dispatch(mapping):
        if isinstance(mapping, abc.Sequence):
            return [dispatch(m) for m in mapping]
        return inputs[mapping]

    return dispatch(dispatch_mapping)


if __name__ == "__main__":
    key = jax.random.PRNGKey(0)

    # 3 input streams, each a small NCHW tensor: batch=2, channels=4, spatial=16.
    N, C, H, W = 2, 4, 16, 16
    num_streams = 3
    keys = jax.random.split(key, num_streams)
    inputs = [
        jax.random.normal(k, (N, C, H, W), dtype=jnp.float32) for k in keys
    ]

    # Mapping exercising grouping, passthrough, and duplication: [[0,1], 2, 1]
    dispatch_mapping = [[0, 1], 2, 1]

    module = ParallelDispatchPallas(dispatch_mapping)
    out = module(inputs)
    out = jax.tree_util.tree_map(jax.block_until_ready, out)

    ref = _reference(inputs, dispatch_mapping)

    # Structural + numerical check.
    flat_out, tdef_out = jax.tree_util.tree_flatten(out)
    flat_ref, tdef_ref = jax.tree_util.tree_flatten(ref)
    assert tdef_out == tdef_ref, (tdef_out, tdef_ref)
    for a, b in zip(flat_out, flat_ref):
        assert a.shape == b.shape and a.dtype == b.dtype
        assert jnp.array_equal(a, b)

    print("KERNEL_OK")
</pallas_src>

<mosaic_0001>
module attributes {stable_mosaic.version = 11 : i64} {
  func.func @kernel(%arg0: memref<2x4x16x16xf32, #tpu.memory_space<any>>, %arg1: memref<2x4x16x16xf32, #tpu.memory_space<any>>, %arg2: memref<2x4x16x16xf32, #tpu.memory_space<any>>, %arg3: memref<2x4x16x16xf32, #tpu.memory_space<any>>, %arg4: memref<2x4x16x16xf32, #tpu.memory_space<any>>, %arg5: memref<2x4x16x16xf32, #tpu.memory_space<any>>, %arg6: memref<3x!tpu.dma_semaphore, #tpu.memory_space<semaphore_mem>>) attributes {dimension_semantics = [], scalar_prefetch = 0 : i64, scratch_operands = 1 : i64, tpu.core_type = #tpu.core_type<tc>} {
    %c0_i32 = arith.constant 0 : i32
    %0 = tpu.memref_slice %arg6[%c0_i32] : memref<3x!tpu.dma_semaphore, #tpu.memory_space<semaphore_mem>> -> memref<1x!tpu.dma_semaphore, #tpu.memory_space<semaphore_mem>>
    %1 = tpu.memref_squeeze %0 : memref<1x!tpu.dma_semaphore, #tpu.memory_space<semaphore_mem>> -> memref<!tpu.dma_semaphore, #tpu.memory_space<semaphore_mem>>
    tpu.enqueue_dma source(%arg0 : memref<2x4x16x16xf32, #tpu.memory_space<any>>) target(%arg3 : memref<2x4x16x16xf32, #tpu.memory_space<any>>) target_semaphore(%1 : memref<!tpu.dma_semaphore, #tpu.memory_space<semaphore_mem>>)
    %c1_i32 = arith.constant 1 : i32
    %2 = tpu.memref_slice %arg6[%c1_i32] : memref<3x!tpu.dma_semaphore, #tpu.memory_space<semaphore_mem>> -> memref<1x!tpu.dma_semaphore, #tpu.memory_space<semaphore_mem>>
    %3 = tpu.memref_squeeze %2 : memref<1x!tpu.dma_semaphore, #tpu.memory_space<semaphore_mem>> -> memref<!tpu.dma_semaphore, #tpu.memory_space<semaphore_mem>>
    tpu.enqueue_dma source(%arg1 : memref<2x4x16x16xf32, #tpu.memory_space<any>>) target(%arg4 : memref<2x4x16x16xf32, #tpu.memory_space<any>>) target_semaphore(%3 : memref<!tpu.dma_semaphore, #tpu.memory_space<semaphore_mem>>)
    %c2_i32 = arith.constant 2 : i32
    %4 = tpu.memref_slice %arg6[%c2_i32] : memref<3x!tpu.dma_semaphore, #tpu.memory_space<semaphore_mem>> -> memref<1x!tpu.dma_semaphore, #tpu.memory_space<semaphore_mem>>
    %5 = tpu.memref_squeeze %4 : memref<1x!tpu.dma_semaphore, #tpu.memory_space<semaphore_mem>> -> memref<!tpu.dma_semaphore, #tpu.memory_space<semaphore_mem>>
    tpu.enqueue_dma source(%arg2 : memref<2x4x16x16xf32, #tpu.memory_space<any>>) target(%arg5 : memref<2x4x16x16xf32, #tpu.memory_space<any>>) target_semaphore(%5 : memref<!tpu.dma_semaphore, #tpu.memory_space<semaphore_mem>>)
    %c0_i32_0 = arith.constant 0 : i32
    %6 = tpu.memref_slice %arg6[%c0_i32_0] : memref<3x!tpu.dma_semaphore, #tpu.memory_space<semaphore_mem>> -> memref<1x!tpu.dma_semaphore, #tpu.memory_space<semaphore_mem>>
    %7 = tpu.memref_squeeze %6 : memref<1x!tpu.dma_semaphore, #tpu.memory_space<semaphore_mem>> -> memref<!tpu.dma_semaphore, #tpu.memory_space<semaphore_mem>>
    tpu.wait_dma2 semaphore(%7 : memref<!tpu.dma_semaphore, #tpu.memory_space<semaphore_mem>>) src(%arg0 : memref<2x4x16x16xf32, #tpu.memory_space<any>>) dst(%arg3 : memref<2x4x16x16xf32, #tpu.memory_space<any>>)
    %c1_i32_1 = arith.constant 1 : i32
    %8 = tpu.memref_slice %arg6[%c1_i32_1] : memref<3x!tpu.dma_semaphore, #tpu.memory_space<semaphore_mem>> -> memref<1x!tpu.dma_semaphore, #tpu.memory_space<semaphore_mem>>
    %9 = tpu.memref_squeeze %8 : memref<1x!tpu.dma_semaphore, #tpu.memory_space<semaphore_mem>> -> memref<!tpu.dma_semaphore, #tpu.memory_space<semaphore_mem>>
    tpu.wait_dma2 semaphore(%9 : memref<!tpu.dma_semaphore, #tpu.memory_space<semaphore_mem>>) src(%arg1 : memref<2x4x16x16xf32, #tpu.memory_space<any>>) dst(%arg4 : memref<2x4x16x16xf32, #tpu.memory_space<any>>)
    %c2_i32_2 = arith.constant 2 : i32
    %10 = tpu.memref_slice %arg6[%c2_i32_2] : memref<3x!tpu.dma_semaphore, #tpu.memory_space<semaphore_mem>> -> memref<1x!tpu.dma_semaphore, #tpu.memory_space<semaphore_mem>>
    %11 = tpu.memref_squeeze %10 : memref<1x!tpu.dma_semaphore, #tpu.memory_space<semaphore_mem>> -> memref<!tpu.dma_semaphore, #tpu.memory_space<semaphore_mem>>
    tpu.wait_dma2 semaphore(%11 : memref<!tpu.dma_semaphore, #tpu.memory_space<semaphore_mem>>) src(%arg2 : memref<2x4x16x16xf32, #tpu.memory_space<any>>) dst(%arg5 : memref<2x4x16x16xf32, #tpu.memory_space<any>>)
    return
  }
}

</mosaic_0001>

<bundles_post_ra>
// kernel: tpu_custom_call.1
= control target key start
LH: loop header
LB: loop body
LE: loop exit
PB: predicated region body
PF: predicated region fallthrough
CT: control target
= control target key end

     0   :  { %s97_s18 = smov [#allocation2]   ;;  %s98_s19 = smov [#allocation3]   ;;  %s152_s0 = inlined_call_operand.hbm [shape: f32[2,4,16,16], index: 0, kind: input, shape index: {}]   ;;  %s153_s3 = inlined_call_operand.hbm [shape: f32[2,4,16,16], index: 3, kind: output, shape index: {0}]   ;;  %s154_s1 = inlined_call_operand.hbm [shape: f32[2,4,16,16], index: 1, kind: input, shape index: {}]   ;;  %s155_s4 = inlined_call_operand.hbm [shape: f32[2,4,16,16], index: 4, kind: output, shape index: {1}]   ;;  %s156_s2 = inlined_call_operand.hbm [shape: f32[2,4,16,16], index: 2, kind: input, shape index: {}]   ;;  %s157_s5 = inlined_call_operand.hbm [shape: f32[2,4,16,16], index: 5, kind: output, shape index: {2}]  }
   0x1   :  { %s99_s20 = smov 0   ;;  %s100_s25 = smov [#allocation2 + $0x1]  }
   0x2   :  { %23 = dma.general %s152_s0, 2048, %s153_s3, %s97_s18, %s98_s19, [#allocation4], %s99_s20, 0  }
   0x3   :  { %s101_s26 = smov [#allocation5]   ;;  %s102_s6 = smov [#allocation2 + $0x2]  }
   0x4   :  { %37 = dma.general %s154_s1, 2048, %s155_s4, %s100_s25, %s101_s26, [#allocation6], %s99_s20, 0  }
   0x5   :  { %s103_s7 = smov [#allocation7]  }
   0x6   :  { %51 = dma.general %s156_s2, 2048, %s157_s5, %s102_s6, %s103_s7, [#allocation8], %s99_s20, 0  }
   0x7   :  { %91 = dma.done.wait [#allocation2], 2048 }
   0x8   :  { %92 = vsyncadd [#allocation2], 4294965248 }
   0x9   :  { %93 = dma.done.wait [#allocation2 + $0x1], 2048 }
   0xa   :  { %94 = vsyncadd [#allocation2 + $0x1], 4294965248 }
   0xb   :  { %95 = dma.done.wait [#allocation2 + $0x2], 2048 }
   0xc   :  { %96 = vsyncadd [#allocation2 + $0x2], 4294965248 }
   0xd   :  { %61 = vsyncmov [#allocation2] }
  0x10   :  { %s62_s0 = vpop.sfrf %61 }
  0x11   :  { %p81_p0 = scmp.ne.s32.totalorder %s62_s0, 0 }
  0x13   :  { %66 = shalt.err (%p81_p0)  }
  0x14   :  { %68 = vsyncmov [#allocation2 + $0x1] }
  0x17   :  { %s69_s1 = vpop.sfrf %68 }
  0x18   :  { %p82_p1 = scmp.ne.s32.totalorder %s69_s1, 0 }
  0x1a   :  { %73 = shalt.err (%p82_p1)  }
  0x1b   :  { %75 = vsyncmov [#allocation2 + $0x2] }
  0x1e   :  { %s76_s3 = vpop.sfrf %75 }
  0x1f   :  { %p83_p2 = scmp.ne.s32.totalorder %s76_s3, 0 }
  0x21   :  { %80 = shalt.err (%p83_p2)  }

</bundles_post_ra>
